<compile_context>
chip_gen: v7x
topology: tpu7x:2x2x1
jax: 0.10.0
libtpu: 0.0.40
codegen_flags: <defaults>
</compile_context>

<pallas_src>
import functools

import jax
import jax.numpy as jnp
from jax.experimental import pallas as pl
from jax.experimental.pallas import tpu as pltpu


def _focal_loss_kernel(logits_ref, targets_ref, alpha_ref, out_ref, *,
                       gamma, batch_size, block_rows):
    pid = pl.program_id(0)

    logits = logits_ref[...].astype(jnp.float32)      # (TB, C)
    targets = targets_ref[...]                        # (TB, 1) int32
    alpha = alpha_ref[...].astype(jnp.float32)        # (1, C)

    tb, num_classes = logits.shape

    # Target-class gather along lanes via an iota compare.  A single boolean
    # mask feeds both gathers (no float32 one-hot materialized).  NOTE: an
    # out-of-range target yields an all-False mask and contributes 0 to the
    # loss instead of erroring like torch.gather would.
    col_ids = jax.lax.broadcasted_iota(jnp.int32, (tb, num_classes), 1)
    sel = col_ids == targets                                      # (TB, C) bool

    # Numerically stable log-softmax gathered at the target class without
    # materializing a (TB, C) log_probs temporary:
    #   log p_t = logit_t - row_max - log(sum(exp(logits - row_max)))
    row_max = jnp.max(logits, axis=1, keepdims=True)              # (TB, 1)
    lse = jnp.log(jnp.sum(jnp.exp(logits - row_max), axis=1, keepdims=True))
    logit_t = jnp.sum(jnp.where(sel, logits, 0.0), axis=1, keepdims=True)
    alpha_t = jnp.sum(jnp.where(sel, alpha, 0.0), axis=1, keepdims=True)

    logp_t = logit_t - row_max - lse                              # (TB, 1), <= 0
    ce_loss = -logp_t

    # one_minus_pt = -expm1(logp_t): exact 1 - exp(x) path except very near
    # x == 0 (p_t -> 1) where it cancels catastrophically; there a short
    # Taylor series of expm1 is used instead.  Only guaranteed-lowerable ops.
    x = logp_t
    em1_taylor = x * (1.0 + x * (0.5 + x * jnp.float32(1.0 / 6.0)))
    em1 = jnp.where(x > jnp.float32(-1e-3), em1_taylor, jnp.exp(x) - 1.0)
    one_minus_pt = -em1                                           # (TB, 1)

    # Integer gamma -> VPU multiplies; avoid jnp.power (log+exp on the EUP).
    if gamma == 0.0:
        focal = jnp.ones_like(one_minus_pt)
    elif gamma == 1.0:
        focal = one_minus_pt
    elif gamma == 2.0:
        focal = one_minus_pt * one_minus_pt
    elif gamma == 3.0:
        focal = one_minus_pt * one_minus_pt * one_minus_pt
    else:
        safe = jnp.maximum(one_minus_pt, jnp.float32(1e-38))
        focal = jnp.where(one_minus_pt > 0.0,
                          jnp.exp(jnp.float32(gamma) * jnp.log(safe)),
                          jnp.float32(0.0))

    per_sample = focal * (alpha_t * ce_loss)                      # (TB, 1)

    # Mask rows past the true batch (garbage rows of the last partial tile).
    # Mask per_sample *before* the reduction so any NaN there is dropped.
    row_ids = jax.lax.broadcasted_iota(jnp.int32, (tb, 1), 0) + pid * block_rows
    per_sample = jnp.where(row_ids < batch_size, per_sample, jnp.float32(0.0))

    # Per-tile partial sum to this tile's own output block (no carried
    # accumulator) so the grid axis can run "parallel" across TensorCores.
    tile_sum = jnp.sum(per_sample)
    out_ref[...] = jnp.full(out_ref.shape, tile_sum, jnp.float32)


def _padded_lanes(num_classes):
    return ((num_classes + 127) // 128) * 128


def _vmem_footprint_bytes(block_rows, num_classes):
    """Conservative VMEM footprint: lane-padded, double-buffered input streams
    plus ~3 logits-tile-sized in-kernel temporaries (iota / select / exp)."""
    padded_c = _padded_lanes(num_classes)
    logits_tile = block_rows * padded_c * 4
    targets_tile = block_rows * 128 * 4      # (rows, 1) int32 lane-pads to 128
    alpha_tile = 8 * padded_c * 4
    out_tile = 8 * 128 * 4
    return (2 * logits_tile          # double-buffered logits stream
            + 3 * logits_tile        # in-kernel (TB, C) temporaries
            + 2 * targets_tile       # double-buffered targets stream
            + 2 * alpha_tile
            + 2 * out_tile)


def _choose_block_rows(batch, num_classes,
                       vmem_budget_bytes=40 * 1024 * 1024, max_rows=8192):
    """Largest 8-aligned row tile whose *full* footprint (double-buffering,
    lane padding, in-kernel temporaries) fits the VMEM budget.  The budget is
    kept under v7x's 64 MiB physical VMEM; v5e/v6e have 128 MiB so the same
    choice is safe everywhere once vmem_limit_bytes is raised to match."""
    if batch <= 8:
        return batch
    padded_c = _padded_lanes(num_classes)
    per_row = 5 * padded_c * 4 + 2 * 128 * 4
    rows = max(8, min(max_rows, vmem_budget_bytes // per_row))
    rows = (rows // 8) * 8
    rows = min(rows, (batch // 8) * 8)       # block no larger than the batch
    return max(8, rows)


def weighted_focal_loss(logits, targets, alpha=None, gamma=2.0, block_rows=None):
    """logits: (B, C) float (f32 or bf16, upcast in-kernel), targets: (B,) int,
    alpha: (C,) float or None.  Returns the scalar mean focal loss."""
    B, C = logits.shape
    if alpha is None:
        alpha = jnp.ones((C,), dtype=jnp.float32)
    targets2d = targets.reshape(B, 1).astype(jnp.int32)
    alpha2d = jnp.asarray(alpha, dtype=jnp.float32).reshape(1, C)

    if block_rows is None:
        block_rows = _choose_block_rows(B, C)
    block_rows = int(block_rows)
    if B > 8:
        block_rows = max(8, min((block_rows // 8) * 8, (B // 8) * 8))
    else:
        block_rows = B
    num_tiles = int(pl.cdiv(B, block_rows))

    footprint = _vmem_footprint_bytes(block_rows, C)
    vmem_limit = int(min(48 * 1024 * 1024,
                         max(16 * 1024 * 1024, footprint * 5 // 4 + (1 << 20))))

    # TODO(synk): when num_classes < 128 and a trace shows the kernel below the
    # HBM roofline (EUP/VPU-bound), fold 128//C rows per lane-row via a
    # contiguous (B, C) -> (B//k, k*C) wrapper reshape plus segmented
    # reductions to recover the 128/C lane utilization.

    kernel = functools.partial(_focal_loss_kernel, gamma=float(gamma),
                               batch_size=B, block_rows=block_rows)

    cost = pl.CostEstimate(
        flops=int(10 * B * C),
        transcendentals=int(B * C + 3 * B),
        bytes_accessed=int(logits.dtype.itemsize * B * C + 4 * B + 4 * C
                           + num_tiles * 8 * 128 * 4),
    )

    partials = pl.pallas_call(
        kernel,
        out_shape=jax.ShapeDtypeStruct((num_tiles, 8, 128), jnp.float32),
        grid=(num_tiles,),
        in_specs=[
            pl.BlockSpec((block_rows, C), lambda i: (i, 0)),   # logits tile
            pl.BlockSpec((block_rows, 1), lambda i: (i, 0)),   # targets tile
            pl.BlockSpec((1, C), lambda i: (0, 0)),            # alpha (resident)
        ],
        out_specs=pl.BlockSpec((1, 8, 128), lambda i: (i, 0, 0)),
        compiler_params=pltpu.CompilerParams(
            dimension_semantics=("parallel",),   # shard tiles across TCs (v7x)
            vmem_limit_bytes=vmem_limit),
        cost_estimate=cost,
    )(logits, targets2d, alpha2d)

    # Tiny (num_tiles,) reduction + mean done by XLA in the wrapper.
    return jnp.sum(partials[:, 0, 0]) / jnp.float32(B)


if __name__ == "__main__":
    B, C = 200, 32            # B not a multiple of the tile -> exercises masking
    GAMMA = 2.0
    BLOCK_ROWS = 64           # 4 grid steps; last tile is partial

    key = jax.random.PRNGKey(0)
    k_logits, k_targets, k_alpha = jax.random.split(key, 3)

    logits = jax.random.normal(k_logits, (B, C), dtype=jnp.float32)
    targets = jax.random.randint(k_targets, (B,), 0, C, dtype=jnp.int32)
    # Deterministic per-class weights (stand-in for the `alpha` list in __init__).
    alpha = jax.random.uniform(k_alpha, (C,), dtype=jnp.float32,
                               minval=0.5, maxval=1.5)

    loss = weighted_focal_loss(logits, targets, alpha, gamma=GAMMA,
                               block_rows=BLOCK_ROWS)
    loss = jax.block_until_ready(loss)

    # Pure-JAX reference check (same math as the PyTorch forward).
    probs = jax.nn.softmax(logits, axis=1)
    p_t = probs[jnp.arange(B), targets]
    ref = jnp.mean(((1.0 - p_t) ** GAMMA) * (-jnp.log(p_t)) * alpha[targets])
    assert jnp.allclose(loss, ref, rtol=1e-5, atol=1e-5), (loss, ref)

    print("KERNEL_OK")
</pallas_src>

<mosaic_0001>
module attributes {stable_mosaic.version = 11 : i64} {
  func.func @_focal_loss_kernel(%arg0: i32, %arg1: memref<64x32xf32, #tpu.memory_space<vmem>>, %arg2: memref<64x1xi32, #tpu.memory_space<vmem>>, %arg3: memref<1x32xf32, #tpu.memory_space<vmem>>, %arg4: memref<1x8x128xf32, #tpu.memory_space<vmem>>) attributes {dimension_semantics = [#tpu.dimension_semantics<parallel>], iteration_bounds = array<i64: 4>, scalar_prefetch = 0 : i64, scratch_operands = 0 : i64, tpu.core_type = #tpu.core_type<tc>, window_params = [{transform_indices = @transform_0, window_bounds = array<i64: 64, 32>}, {transform_indices = @transform_1, window_bounds = array<i64: 64, 1>}, {pipeline_mode = #tpu.pipeline_mode<synchronous>, transform_indices = @transform_2, window_bounds = array<i64: 1, 32>}, {transform_indices = @transform_3, window_bounds = array<i64: 1, 8, 128>}]} {
    %c0 = arith.constant 0 : index
    %c0_0 = arith.constant 0 : index
    %0 = vector.load %arg1[%c0, %c0_0] : memref<64x32xf32, #tpu.memory_space<vmem>>, vector<64x32xf32>
    %c0_1 = arith.constant 0 : index
    %c0_2 = arith.constant 0 : index
    %1 = vector.load %arg2[%c0_1, %c0_2] : memref<64x1xi32, #tpu.memory_space<vmem>>, vector<64x1xi32>
    %c0_3 = arith.constant 0 : index
    %c0_4 = arith.constant 0 : index
    %2 = vector.load %arg3[%c0_3, %c0_4] : memref<1x32xf32, #tpu.memory_space<vmem>>, vector<1x32xf32>
    %3 = tpu.iota {dimensions = array<i32: 1>} : vector<64x32xi32>
    %4 = vector.broadcast %1 : vector<64x1xi32> to vector<64x32xi32>
    %5 = arith.cmpi eq, %3, %4 : vector<64x32xi32>
    %cst = arith.constant dense<0xFF800000> : vector<64xf32>
    %6 = vector.multi_reduction <maximumf>, %0, %cst [1] : vector<64x32xf32> to vector<64xf32>
    %7 = vector.shape_cast %6 : vector<64xf32> to vector<64x1xf32>
    %8 = vector.broadcast %7 : vector<64x1xf32> to vector<64x32xf32>
    %9 = arith.subf %0, %8 : vector<64x32xf32>
    %10 = math.exp %9 : vector<64x32xf32>
    %cst_5 = arith.constant dense<0.000000e+00> : vector<64xf32>
    %11 = vector.multi_reduction <add>, %10, %cst_5 [1] : vector<64x32xf32> to vector<64xf32>
    %12 = vector.shape_cast %11 : vector<64xf32> to vector<64x1xf32>
    %13 = math.log %12 : vector<64x1xf32>
    %cst_6 = arith.constant 0.000000e+00 : f32
    %14 = vector.broadcast %cst_6 : f32 to vector<64x32xf32>
    %15 = arith.select %5, %0, %14 : vector<64x32xi1>, vector<64x32xf32>
    %cst_7 = arith.constant dense<0.000000e+00> : vector<64xf32>
    %16 = vector.multi_reduction <add>, %15, %cst_7 [1] : vector<64x32xf32> to vector<64xf32>
    %17 = vector.shape_cast %16 : vector<64xf32> to vector<64x1xf32>
    %cst_8 = arith.constant 0.000000e+00 : f32
    %18 = vector.shape_cast %2 : vector<1x32xf32> to vector<1x32xf32>
    %19 = vector.broadcast %18 : vector<1x32xf32> to vector<64x32xf32>
    %20 = vector.broadcast %cst_8 : f32 to vector<64x32xf32>
    %21 = arith.select %5, %19, %20 : vector<64x32xi1>, vector<64x32xf32>
    %cst_9 = arith.constant dense<0.000000e+00> : vector<64xf32>
    %22 = vector.multi_reduction <add>, %21, %cst_9 [1] : vector<64x32xf32> to vector<64xf32>
    %23 = vector.shape_cast %22 : vector<64xf32> to vector<64x1xf32>
    %24 = arith.subf %17, %7 : vector<64x1xf32>
    %25 = arith.subf %24, %13 : vector<64x1xf32>
    %cst_10 = arith.constant 0.000000e+00 : f32
    %26 = vector.broadcast %cst_10 : f32 to vector<64x1xf32>
    %27 = arith.subf %26, %25 : vector<64x1xf32>
    %cst_11 = arith.constant 0.166666672 : f32
    %28 = vector.broadcast %cst_11 : f32 to vector<64x1xf32>
    %29 = arith.mulf %25, %28 : vector<64x1xf32>
    %cst_12 = arith.constant 5.000000e-01 : f32
    %30 = vector.broadcast %cst_12 : f32 to vector<64x1xf32>
    %31 = arith.addf %30, %29 : vector<64x1xf32>
    %32 = arith.mulf %25, %31 : vector<64x1xf32>
    %cst_13 = arith.constant 1.000000e+00 : f32
    %33 = vector.broadcast %cst_13 : f32 to vector<64x1xf32>
    %34 = arith.addf %33, %32 : vector<64x1xf32>
    %35 = arith.mulf %25, %34 : vector<64x1xf32>
    %cst_14 = arith.constant -1.000000e-03 : f32
    %36 = vector.broadcast %cst_14 : f32 to vector<64x1xf32>
    %37 = arith.cmpf ogt, %25, %36 : vector<64x1xf32>
    %38 = math.exp %25 : vector<64x1xf32>
    %cst_15 = arith.constant 1.000000e+00 : f32
    %39 = vector.broadcast %cst_15 : f32 to vector<64x1xf32>
    %40 = arith.subf %38, %39 : vector<64x1xf32>
    %41 = arith.select %37, %35, %40 : vector<64x1xi1>, vector<64x1xf32>
    %cst_16 = arith.constant 0.000000e+00 : f32
    %42 = vector.broadcast %cst_16 : f32 to vector<64x1xf32>
    %43 = arith.subf %42, %41 : vector<64x1xf32>
    %44 = arith.mulf %43, %43 : vector<64x1xf32>
    %45 = arith.mulf %23, %27 : vector<64x1xf32>
    %46 = arith.mulf %44, %45 : vector<64x1xf32>
    %47 = tpu.iota {dimensions = array<i32: 0>} : vector<64x1xi32>
    %c64_i32 = arith.constant 64 : i32
    %48 = arith.muli %arg0, %c64_i32 : i32
    %49 = vector.broadcast %48 : i32 to vector<64x1xi32>
    %50 = arith.addi %47, %49 : vector<64x1xi32>
    %c200_i32 = arith.constant 200 : i32
    %51 = vector.broadcast %c200_i32 : i32 to vector<64x1xi32>
    %52 = arith.cmpi slt, %50, %51 : vector<64x1xi32>
    %cst_17 = arith.constant 0.000000e+00 : f32
    %53 = vector.broadcast %cst_17 : f32 to vector<64x1xf32>
    %54 = arith.select %52, %46, %53 : vector<64x1xi1>, vector<64x1xf32>
    %55 = vector.shape_cast %54 : vector<64x1xf32> to vector<1x64x1xf32>
    %cst_18 = arith.constant dense<0.000000e+00> : vector<1xf32>
    %56 = vector.multi_reduction <add>, %55, %cst_18 [1, 2] : vector<1x64x1xf32> to vector<1xf32>
    %57 = vector.shape_cast %56 : vector<1xf32> to vector<1x1x1xf32>
    %58 = vector.extract %57[0, 0, 0] : f32 from vector<1x1x1xf32>
    %59 = vector.broadcast %58 : f32 to vector<1x8x128xf32>
    %c0_19 = arith.constant 0 : index
    %c0_20 = arith.constant 0 : index
    %c0_21 = arith.constant 0 : index
    %60 = vector.load %arg4[%c0_19, %c0_20, %c0_21] : memref<1x8x128xf32, #tpu.memory_space<vmem>>, vector<1x8x128xf32>
    tpu.vector_store %arg4[%c0_19, %c0_20, %c0_21], %59 {strides = array<i32>} : memref<1x8x128xf32, #tpu.memory_space<vmem>>, vector<1x8x128xf32>,
    return
  }
  func.func @transform_0(%arg0: i32) -> (i32, i32) {
    %c0_i32 = arith.constant 0 : i32
    %c0_i32_0 = arith.constant 0 : i32
    return %arg0, %c0_i32 : i32, i32
  }
  func.func @transform_1(%arg0: i32) -> (i32, i32) {
    %c0_i32 = arith.constant 0 : i32
    %c0_i32_0 = arith.constant 0 : i32
    return %arg0, %c0_i32 : i32, i32
  }
  func.func @transform_2(%arg0: i32) -> (i32, i32) {
    %c0_i32 = arith.constant 0 : i32
    %c0_i32_0 = arith.constant 0 : i32
    %c0_i32_1 = arith.constant 0 : i32
    return %c0_i32, %c0_i32_0 : i32, i32
  }
  func.func @transform_3(%arg0: i32) -> (i32, i32, i32) {
    %c0_i32 = arith.constant 0 : i32
    %c0_i32_0 = arith.constant 0 : i32
    %c0_i32_1 = arith.constant 0 : i32
    return %arg0, %c0_i32, %c0_i32_0 : i32, i32, i32
  }
}

</mosaic_0001>

<bundles_post_ra>
// kernel: tpu_custom_call.1
= control target key start
LH: loop header
LB: loop body
LE: loop exit
PB: predicated region body
PF: predicated region fallthrough
CT: control target
= control target key end

     0   :  { %8 = vsyncpa [#allocation3], 0  ;;  %s1335_s0 = inlined_call_operand.vmem [shape: f32[200,32], index: 0, kind: input, shape index: {}]   ;;  %s1336_s1 = inlined_call_operand.vmem [shape: s32[200,1], index: 1, kind: input, shape index: {}]   ;;  %s1337_s2 = inlined_call_operand.vmem [shape: f32[1,32], index: 2, kind: input, shape index: {}]   ;;  %s1338_s3 = inlined_call_operand.hbm [shape: f32[4,8,128], index: 3, kind: output, shape index: {}]  }
   0x1   :  { %10 = vsyncpa [#allocation3 + $0x1], 0  ;;  %s927_s12 = smov 0   ;;  %s929_s13 = smov 0  }
   0x2   :  { %s931_s14 = smov 0   ;;  %s933_s15 = smov 0  }
   0x3 LB: > { %s948_s16 = sadd.s32 4294967295, %s903_s15   ;;  %s726_s17 = sadd.s32 4294967294, %s903_s15   ;;  %s903_s15 = sphi %s933_s15, %s1344_s15   ;;  %s899_s14 = sphi %s931_s14, %s1343_s14   ;;  %s895_s13 = sphi %s929_s13, %s1342_s13   ;;  %s891_s12 = sphi %s927_s12, %s1341_s12  }
   0x4   : > { %s952_s18 = sadd.s32 1, %s903_s15   ;;  %s96_s19 = sadd.s32 1, %s899_s14 }
   0x5   : > { %s93_s20 = ssub.s32 %s903_s15, %s952_s18  ;;  %p106_p0 = scmp.ne.s32.totalorder %s899_s14, %s895_s13 }
   0x6   : > { %p94_p1 = scmp.eq.s32.totalorder %s93_s20, 0  ;;  %p107_p2 = scmp.eq.s32.totalorder %s948_s16, 3 }
   0x7   : > { %p112_p3 = scmp.ne.s32.totalorder %s895_s13, %s891_s12  ;;  %p113_p4 = scmp.eq.s32.totalorder %s726_s17, 3 }
   0x8   : > { %s963_s21 = scalar_select %p94_p1, %s899_s14, %s96_s19  }
   0x9   : > { %p965_p5 = por %p107_p2, %p106_p0  ;;  %p969_p6 = por %p113_p4, %p112_p3 }
   0xa   : > { %p729_p7 = scmp.ge.s32.totalorder %s903_s15, 1  ;;  %p168_p8 = scmp.lt.s32.totalorder %s903_s15, 5 }
   0xc   : > { %p169_p9 = pnand %p729_p7, %p168_p8 }
   0xd   : > { %s731_s24 = sshll.u32 (!%p169_p9), %s948_s16, 3  ;;  %v905_v0 = vmov (!%p169_p9), 0   ;;  %vm284_vm0 = vcmask (!%p169_p9), 261120   ;;  %v250_v37 = vlaneseq (!%p169_p9)  ;;  %s744_s7 = sshll.u32 (!%p169_p9), %s948_s16, 6  ;;  %vm614_vm14 = vcmask (!%p169_p9), 7168  }
   0xe   : > { %172 = sbr.rel (%p169_p9) target bundleno = 621 (0x26d), region = 32  ;;  %p210_p10 = scmp.lt.s32.totalorder (!%p169_p9), %s731_s24, 24  ;;  %792 = vset.pattern.permute.xlu1 (!%p169_p9), %v905_v0  ;;  %791 = vset.pattern.permute.xlu0 (!%p169_p9), %v905_v0 }
   0xf   : > { %v1046_v44 = vand.u32 (!%p169_p9), 127, %v250_v37  ;;  %s202_s8 = sand.u32 (!%p169_p9), 1, %s895_s13   ;;  %s746_s17 = sshll.u32 (!%p169_p9), %s948_s16, 7 }
  0x10   : > { %s730_s9 = sshll.u32 (!%p169_p9), %s202_s8, 3  ;;  %s642_s26 = scalar_lea.sflag (!%p169_p9), [#allocation3], %s202_s8 }
  0x11   : > { %s204_s10 = scalar_lea.vmem (!%p169_p9), [#allocation2], %s730_s9  ;;  %s906_s16 = smov (!%p169_p9), [#allocation2]  }
  0x12   : > { %s655_s11 = sshll.u32 (!%p169_p9), %s204_s10, 4  ;;  %s1290_s11 = int_to_ptr.vmem [resolvable:$true] %s655_s11 }
  0x13   : > { %s841_s27 = scalar_lea.vmem (!%p169_p9), %s1290_s11, 128 }
  0x14   : > { %p842_p11 = scmp.ne.s32.totalorder (!%p169_p9), %s1290_s11, %s841_s27 }
  0x15   : > { %s1346_s24 = smov (!%p210_p10, %s731_s24), 24 }
  0x16   : > { %s732_s25 = sshll.u32 %s1346_s24, 3  ;;  %p843_p12 = pnand %p842_p11, %p965_p5 }
  0x17   : > { %s213_s28 = scalar_lea.vmem %s1335_s0, %s732_s25  ;;  %s227_s4 = scalar_lea.vmem %s1336_s1, %s732_s25 }
  0x18   : > { %v982_v1 = vld [vmem:[%s213_s28 + $0x10] sm:$0xff]  ;;  %v984_v2 = vld [vmem:[%s213_s28] sm:$0xff]  ;;  %v986_v3 = vld [vmem:[%s213_s28 + $0x18] sm:$0xff]  ;;  %s1295_s25 = scalar_lea.hbm %s1338_s3, %s746_s17  ;;  %p844_p13 = pneg %p843_p12 }
  0x19   : > { %v291_v4 = vsel %vm284_vm0, %v982_v1, -inf  ;;  %v285_v5 = vsel %vm284_vm0, %v984_v2, -inf  ;;  %v992_v6 = vld [vmem:[%s213_s28 + $0x8] sm:$0xff]  ;;  %v294_v7 = vsel %vm284_vm0, %v986_v3, -inf  ;;  %v1000_v10 = vld [vmem:[%s213_s28 + $0x20] sm:$0xff]  ;;  %v1006_v13 = vld [vmem:[%s213_s28 + $0x38] sm:$0xff] }
  0x1a   : > { %292 = vmax.xlane.f32.xlu1 %v291_v4  ;;  %286 = vmax.xlane.f32.xlu0 %v285_v5  ;;  %v288_v8 = vsel %vm284_vm0, %v992_v6, -inf  ;;  %v998_v9 = vld [vmem:[%s213_s28 + $0x28] sm:$0xff]  ;;  %v297_v12 = vsel %vm284_vm0, %v1000_v10, -inf  ;;  %v1008_v14 = vld [vmem:[%s213_s28 + $0x30] sm:$0xff]  ;;  %v306_v15 = vsel %vm284_vm0, %v1006_v13, -inf  ;;  %v241_v19 = vld [vmem:[%s227_s4] sm:$0xff] }
  0x1b   : > { %v300_v11 = vsel %vm284_vm0, %v998_v9, -inf  ;;  %v303_v16 = vsel %vm284_vm0, %v1008_v14, -inf  ;;  %v242_v17 = vld [vmem:[%s227_s4 + $0x8] sm:$0xff]  ;;  %v243_v18 = vld [vmem:[%s227_s4 + $0x10] sm:$0xff]  ;;  %v244_v20 = vld [vmem:[%s227_s4 + $0x18] sm:$0xff]  ;;  %s845_s28 = sshll.u32 %s906_s16, 4  ;;  %s846_s28 = int_to_ptr.vmem [resolvable:$false] %s845_s28 }
  0x1c   : > { %v245_v21 = vld [vmem:[%s227_s4 + $0x20] sm:$0xff]  ;;  %v246_v22 = vld [vmem:[%s227_s4 + $0x28] sm:$0xff]  ;;  %v247_v23 = vld [vmem:[%s227_s4 + $0x30] sm:$0xff]  ;;  %s847_s29 = scalar_lea.vmem %s846_s28, 256  ;;  %p848_p0 = scmp.lt.s32.totalorder %s1290_s11, %s846_s28 }
  0x1d   : > { %v248_v24 = vld [vmem:[%s227_s4 + $0x38] sm:$0xff]  ;;  %p849_p1 = scmp.lt.s32.totalorder %s847_s29, %s841_s27 }
  0x1e   : > { %295 = vmax.xlane.f32.xlu1 %v294_v7  ;;  %289 = vmax.xlane.f32.xlu0 %v288_v8 }
  0x1f   : > { %p850_p2 = por %p849_p1, %p848_p0 }
  0x21   : > { %p851_p3 = pnand %p850_p2, %p844_p13 }
  0x22   : > { %301 = vmax.xlane.f32.xlu1 %v300_v11  ;;  %298 = vmax.xlane.f32.xlu0 %v297_v12 }
  0x26   : > { %307 = vmax.xlane.f32.xlu1 %v306_v15  ;;  %304 = vmax.xlane.f32.xlu0 %v303_v16 }
  0x37   : > { %256 = vperm.xlu1 %792, %v242_v17  }
  0x3b   : > { %259 = vperm.xlu1 %792, %v243_v18  }
  0x3c   : > { %253 = vperm.xlu0 %791, %v241_v19  }
  0x3f   : > { %262 = vperm.xlu1 %792, %v244_v20  }
  0x43   : > { %265 = vperm.xlu1 %792, %v245_v21  }
  0x47   : > { %268 = vperm.xlu1 %792, %v246_v22  }
  0x4b   : > { %271 = vperm.xlu1 %792, %v247_v23  }
  0x4f   : > { %274 = vperm.xlu1 %792, %v248_v24  }
  0xa7   : > { %v1017_v25 = vpop.xlane.xlu1 %292  ;;  %v1019_v26 = vpop.xlane.xlu0 %286 }
  0xa8   : > { %v311_v29 = vsub.f32 %v982_v1, %v1017_v25  ;;  %v309_v31 = vsub.f32 %v984_v2, %v1019_v26 }
  0xaa   : > { %v321_v35 = vmul.f32 1.442695, %v311_v29  ;;  %v317_v38 = vmul.f32 1.442695, %v309_v31 }
  0xab   : > { %v1021_v27 = vpop.xlane.xlu1 %295  ;;  %v1023_v28 = vpop.xlane.xlu0 %289 }
  0xac   : > { %v310_v30 = vsub.f32 %v992_v6, %v1023_v28  ;;  %v312_v36 = vsub.f32 %v986_v3, %v1021_v27 }
  0xae   : > { %v319_v32 = vmul.f32 1.442695, %v310_v30  ;;  %v323_v42 = vmul.f32 1.442695, %v312_v36 }
  0xaf   : > { %v1031_v33 = vpop.xlane.xlu1 %301  ;;  %v1033_v34 = vpop.xlane.xlu0 %298 }
  0xb0   : > { %793 = vpow2.f32 %v319_v32  ;;  %v313_v39 = vsub.f32 %v1000_v10, %v1033_v34  ;;  %v314_v43 = vsub.f32 %v998_v9, %v1031_v33  ;;  %v735_v32 = vld [vmem:[%s1337_s2] ss:$0 sm:$0xff] }
  0xb1   : > { %795 = vpow2.f32 %v321_v35 }
  0xb2   : > { %797 = vpow2.f32 %v317_v38  ;;  %v325_v45 = vmul.f32 1.442695, %v313_v39  ;;  %v327_v48 = vmul.f32 1.442695, %v314_v43 }
  0xb3   : > { %v1039_v40 = vpop.xlane.xlu1 %307  ;;  %v1041_v41 = vpop.xlane.xlu0 %304  ;;  %799 = vpow2.f32 %v323_v42 }
  0xb4   : > { %v315_v46 = vsub.f32 %v1008_v14, %v1041_v41  ;;  %801 = vpow2.f32 %v325_v45  ;;  %v316_v49 = vsub.f32 %v1006_v13, %v1039_v40 }
  0xb5   : > { %803 = vpow2.f32 %v327_v48 }
  0xb6   : > { %v329_v50 = vmul.f32 1.442695, %v315_v46  ;;  %v331_v56 = vmul.f32 1.442695, %v316_v49 }
  0xb7   : > { %v1050_v47 = vpop.permute.xlu1 %256 }
  0xb8   : > { %vm277_vm1 = vcmp.eq.s32.totalorder %v1046_v44, %v1050_v47  ;;  %805 = vpow2.f32 %v329_v50 }
  0xb9   : > { %v374_v51 = vsel %vm277_vm1, %v992_v6, 0.0  ;;  %807 = vpow2.f32 %v331_v56  ;;  %v412_v39 = vsel %vm277_vm1, %v735_v32, 0.0 }
  0xba   : > { %v384_v52 = vsel %vm284_vm0, %v374_v51, 0.0  ;;  %v794_v53 = vpop.eup %793  ;;  %v422_v43 = vsel %vm284_vm0, %v412_v39, 0.0 }
  0xbb   : > { %v1061_v54 = vpop.permute.xlu1 %259  ;;  %385 = vadd.xlane.f32.xlu0 %v384_v52  ;;  %v254_v55 = vpop.permute.xlu0 %253  ;;  %v336_v59 = vsel %vm284_vm0, %v794_v53, 0.0 }
  0xbc   : > { %vm276_vm2 = vcmp.eq.s32.totalorder %v1046_v44, %v254_v55  ;;  %v796_v58 = vpop.eup %795  ;;  %vm278_vm3 = vcmp.eq.s32.totalorder %v1046_v44, %v1061_v54 }
  0xbd   : > { %v373_v57 = vsel %vm276_vm2, %v984_v2, 0.0  ;;  %v798_v61 = vpop.eup %797  ;;  %v339_v0 = vsel %vm284_vm0, %v796_v58, 0.0  ;;  %v375_v19 = vsel %vm278_vm3, %v982_v1, 0.0  ;;  %v411_v35 = vsel %vm276_vm2, %v735_v32, 0.0 }
  0xbe   : > { %v381_v60 = vsel %vm284_vm0, %v373_v57, 0.0  ;;  %v800_v63 = vpop.eup %799  ;;  %v333_v4 = vsel %vm284_vm0, %v798_v61, 0.0  ;;  %v387_v20 = vsel %vm284_vm0, %v375_v19, 0.0  ;;  %v413_v38 = vsel %vm278_vm3, %v735_v32, 0.0 }
  0xbf   : > { %v1069_v62 = vpop.permute.xlu1 %262  ;;  %337 = vadd.xlane.f32.xlu0 %v336_v59  ;;  %382 = vadd.xlane.f32.xlu1 %v381_v60  ;;  %v802_v5 = vpop.eup %801  ;;  %v342_v8 = vsel %vm284_vm0, %v800_v63, 0.0  ;;  %v425_v42 = vsel %vm284_vm0, %v413_v38, 0.0 }
  0xc0   : > { %v804_v2 = vpop.eup %803  ;;  %v345_v7 = vsel %vm284_vm0, %v802_v5, 0.0  ;;  %vm279_vm4 = vcmp.eq.s32.totalorder %v1046_v44, %v1069_v62 }
  0xc1   : > { %v348_v16 = vsel %vm284_vm0, %v804_v2, 0.0  ;;  %v376_v1 = vsel %vm279_vm4, %v986_v3, 0.0  ;;  %v414_v45 = vsel %vm279_vm4, %v735_v32, 0.0 }
  0xc2   : > { %v806_v11 = vpop.eup %805  ;;  %v390_v29 = vsel %vm284_vm0, %v376_v1, 0.0  ;;  %v428_v48 = vsel %vm284_vm0, %v414_v45, 0.0 }
  0xc3   : > { %v266_v6 = vpop.permute.xlu1 %265  ;;  %340 = vadd.xlane.f32.xlu0 %v339_v0  ;;  %334 = vadd.xlane.f32.xlu1 %v333_v4  ;;  %v351_v15 = vsel %vm284_vm0, %v806_v11, 0.0  ;;  %v808_v17 = vpop.eup %807 }
  0xc4   : > { %vm280_vm5 = vcmp.eq.s32.totalorder %v1046_v44, %v266_v6  ;;  %v354_v21 = vsel %vm284_vm0, %v808_v17, 0.0  ;;  %v1146_v6 = vshrl.u32 %v250_v37, 7 }
  0xc5   : > { %v377_v22 = vsel %vm280_vm5, %v1000_v10, 0.0 }
  0xc6   : > { %v393_v24 = vsel %vm284_vm0, %v377_v22, 0.0 }
  0xc7   : > { %v269_v12 = vpop.permute.xlu1 %268  ;;  %346 = vadd.xlane.f32.xlu0 %v345_v7  ;;  %343 = vadd.xlane.f32.xlu1 %v342_v8 }
  0xc8   : > { %vm281_vm6 = vcmp.eq.s32.totalorder %v1046_v44, %v269_v12 }
  0xc9   : > { %v378_v30 = vsel %vm281_vm6, %v998_v9, 0.0  ;;  %v419_v9 = vsel %vm284_vm0, %v411_v35, 0.0  ;;  %v416_v49 = vsel %vm281_vm6, %v735_v32, 0.0 }
  0xca   : > { %v396_v31 = vsel %vm284_vm0, %v378_v30, 0.0  ;;  %v434_v51 = vsel %vm284_vm0, %v416_v49, 0.0 }
  0xcb   : > { %v272_v18 = vpop.permute.xlu1 %271  ;;  %352 = vadd.xlane.f32.xlu0 %v351_v15  ;;  %349 = vadd.xlane.f32.xlu1 %v348_v16 }
  0xcc   : > { %vm282_vm7 = vcmp.eq.s32.totalorder %v1046_v44, %v272_v18 }
  0xcd   : > { %v379_v10 = vsel %vm282_vm7, %v1008_v14, 0.0  ;;  %v417_v47 = vsel %vm282_vm7, %v735_v32, 0.0 }
  0xce   : > { %v399_v3 = vsel %vm284_vm0, %v379_v10, 0.0  ;;  %v437_v50 = vsel %vm284_vm0, %v417_v47, 0.0  ;;  %v583_v10 = vadd.s32 24, %v1146_v6 }
  0xcf   : > { %388 = vadd.xlane.f32.xlu0 %v387_v20  ;;  %355 = vadd.xlane.f32.xlu1 %v354_v21  ;;  %v275_v23 = vpop.permute.xlu1 %274  ;;  %v1157_v20 = vstv %s744_s7 }
  0xd0   : > { %vm283_vm8 = vcmp.eq.s32.totalorder %v1046_v44, %v275_v23 }
  0xd1   : > { %v380_v14 = vsel %vm283_vm8, %v1006_v13, 0.0  ;;  %v415_v13 = vsel %vm280_vm5, %v735_v32, 0.0  ;;  %v418_v52 = vsel %vm283_vm8, %v735_v32, 0.0  ;;  %v585_v32 = vadd.s32 40, %v1146_v6 }
  0xd2   : > { %v402_v36 = vsel %vm284_vm0, %v380_v14, 0.0  ;;  %v431_v46 = vsel %vm284_vm0, %v415_v13, 0.0  ;;  %v440_v53 = vsel %vm284_vm0, %v418_v52, 0.0 }
  0xd3   : > { %394 = vadd.xlane.f32.xlu0 %v393_v24  ;;  %391 = vadd.xlane.f32.xlu1 %v390_v29 }
  0xd7   : > { %400 = vadd.xlane.f32.xlu0 %v399_v3  ;;  %397 = vadd.xlane.f32.xlu1 %v396_v31  ;;  %v584_v31 = vadd.s32 32, %v1146_v6 }
  0xdb   : > { %420 = vadd.xlane.f32.xlu0 %v419_v9  ;;  %403 = vadd.xlane.f32.xlu1 %v402_v36 }
  0xdf   : > { %426 = vadd.xlane.f32.xlu0 %v425_v42  ;;  %423 = vadd.xlane.f32.xlu1 %v422_v43 }
  0xe3   : > { %432 = vadd.xlane.f32.xlu0 %v431_v46  ;;  %429 = vadd.xlane.f32.xlu1 %v428_v48 }
  0xe7   : > { %438 = vadd.xlane.f32.xlu0 %v437_v50  ;;  %435 = vadd.xlane.f32.xlu1 %v434_v51  ;;  %v1185_v50 = vadd.s32 %v1157_v20, %v583_v10  ;;  %v1188_v51 = vadd.s32 %v1157_v20, %v584_v31 }
  0xe9   : > { %vm601_vm2 = vcmp.lt.s32.totalorder %v1185_v50, 200  ;;  %vm602_vm4 = vcmp.lt.s32.totalorder %v1188_v51, 200 }
  0xeb   : > { %441 = vadd.xlane.f32.xlu1 %v440_v53 }
 0x148   : > { %v386_v54 = vpop.xlane.xlu0 %385 }
 0x149   : > { %v444_v44 = vsub.f32 %v386_v54, %v1023_v28 }
 0x14c   : > { %v383_v55 = vpop.xlane.xlu1 %382  ;;  %v338_v56 = vpop.xlane.xlu0 %337 }
 0x14d   : > { %809 = vlog2.f32 %v338_v56  ;;  %v443_v7 = vsub.f32 %v383_v55, %v1019_v26  ;;  %v581_v26 = vadd.s32 8, %v1146_v6  ;;  %v1194_v55 = vadd.s32 %v1157_v20, %v585_v32 }
 0x14f   : > { %v1171_v39 = vadd.s32 %v1157_v20, %v581_v26  ;;  %vm603_vm5 = vcmp.lt.s32.totalorder %v1194_v55, 200 }
 0x150   : > { %v335_v57 = vpop.xlane.xlu1 %334  ;;  %v341_v58 = vpop.xlane.xlu0 %340 }
 0x151   : > { %811 = vlog2.f32 %v335_v57  ;;  %vm599_vm11 = vcmp.lt.s32.totalorder %v1171_v39, 200 }
 0x152   : > { %813 = vlog2.f32 %v341_v58 }
 0x154   : > { %v344_v59 = vpop.xlane.xlu1 %343  ;;  %v347_v60 = vpop.xlane.xlu0 %346 }
 0x155   : > { %815 = vlog2.f32 %v344_v59 }
 0x156   : > { %817 = vlog2.f32 %v347_v60 }
 0x157   : > { %v810_v61 = vpop.eup %809 }
 0x158   : > { %v360_v62 = vmul.f32 0.6931472, %v810_v61  ;;  %v350_v63 = vpop.xlane.xlu1 %349  ;;  %v353_v0 = vpop.xlane.xlu0 %352 }
 0x159   : > { %819 = vlog2.f32 %v350_v63 }
 0x15a   : > { %v1143_v4 = vsub.f32 %v444_v44, %v360_v62  ;;  %821 = vlog2.f32 %v353_v0 }
 0x15b   : > { %v812_v5 = vpop.eup %811 }
 0x15c   : > { %v814_v2 = vpop.eup %813  ;;  %v358_v8 = vmul.f32 0.6931472, %v812_v5  ;;  %v356_v11 = vpop.xlane.xlu1 %355  ;;  %v468_v28 = vmul.f32 0.16666667, %v1143_v4  ;;  %v517_v18 = vmul.f32 1.442695, %v1143_v4 }
 0x15d   : > { %v389_v12 = vpop.xlane.xlu0 %388  ;;  %v362_v15 = vmul.f32 0.6931472, %v814_v2  ;;  %823 = vlog2.f32 %v356_v11  ;;  %v460_v44 = vsub.f32 0.0, %v1143_v4  ;;  %vm508_vm9 = vcmp.gt.f32.partialorder %v1143_v4, -0.001 }
 0x15e   : > { %v445_v16 = vsub.f32 %v389_v12, %v1017_v25  ;;  %v1152_v17 = vsub.f32 %v443_v7, %v358_v8  ;;  %v476_v21 = vadd.f32 0.5, %v468_v28  ;;  %v582_v25 = vadd.s32 16, %v1146_v6 }
 0x15f   : > { %v816_v19 = vpop.eup %815  ;;  %825 = vpow2.f32 %v517_v18 }
 0x160   : > { %v1155_v37 = vsub.f32 %v445_v16, %v362_v15  ;;  %v818_v22 = vpop.eup %817  ;;  %v364_v1 = vmul.f32 0.6931472, %v816_v19  ;;  %v392_v23 = vpop.xlane.xlu1 %391  ;;  %v467_v29 = vmul.f32 0.16666667, %v1152_v17  ;;  %v515_v9 = vmul.f32 1.442695, %v1152_v17 }
 0x161   : > { %v395_v24 = vpop.xlane.xlu0 %394  ;;  %v366_v30 = vmul.f32 0.6931472, %v818_v22  ;;  %v446_v3 = vsub.f32 %v392_v23, %v1021_v27  ;;  %v484_v42 = vmul.f32 %v476_v21, %v1143_v4  ;;  %v1180_v48 = vadd.s32 %v1157_v20, %v582_v25 }
 0x162   : > { %v447_v35 = vsub.f32 %v395_v24, %v1033_v34  ;;  %v475_v14 = vadd.f32 0.5, %v467_v29  ;;  %v469_v27 = vmul.f32 0.16666667, %v1155_v37  ;;  %827 = vpow2.f32 %v515_v9 }
 0x163   : > { %v820_v36 = vpop.eup %819  ;;  %v1168_v38 = vsub.f32 %v446_v3, %v364_v1  ;;  %v1177_v34 = vadd.s32 %v1157_v20, %v1146_v6  ;;  %v519_v54 = vmul.f32 1.442695, %v1155_v37  ;;  %v459_v62 = vsub.f32 0.0, %v1152_v17 }
 0x164   : > { %v822_v43 = vpop.eup %821  ;;  %v368_v13 = vmul.f32 0.6931472, %v820_v36  ;;  %v398_v45 = vpop.xlane.xlu1 %397  ;;  %v483_v49 = vmul.f32 %v475_v14, %v1152_v17  ;;  %v1190_v52 = vsub.f32 %v447_v35, %v366_v30  ;;  %v477_v53 = vadd.f32 0.5, %v469_v27 }
 0x165   : > { %v401_v46 = vpop.xlane.xlu0 %400  ;;  %v448_v47 = vsub.f32 %v398_v45, %v1031_v33  ;;  %v370_v56 = vmul.f32 0.6931472, %v822_v43  ;;  %v492_v33 = vadd.f32 1.0, %v484_v42  ;;  %v470_v58 = vmul.f32 0.16666667, %v1168_v38 }
 0x166   : > { %v449_v57 = vsub.f32 %v401_v46, %v1041_v41  ;;  %829 = vpow2.f32 %v519_v54  ;;  %v491_v63 = vadd.f32 1.0, %v483_v49  ;;  %vm507_vm10 = vcmp.gt.f32.partialorder %v1152_v17, -0.001 }
 0x167   : > { %v824_v59 = vpop.eup %823  ;;  %v1198_v60 = vsub.f32 %v448_v47, %v368_v13  ;;  %v478_v0 = vadd.f32 0.5, %v470_v58  ;;  %v461_v41 = vsub.f32 0.0, %v1155_v37  ;;  %v485_v5 = vmul.f32 %v477_v53, %v1155_v37 }
 0x168   : > { %v404_v61 = vpop.xlane.xlu1 %403  ;;  %v521_v2 = vmul.f32 1.442695, %v1168_v38  ;;  %v471_v7 = vmul.f32 0.16666667, %v1190_v52  ;;  %v372_v8 = vmul.f32 0.6931472, %v824_v59  ;;  %v1208_v11 = vsub.f32 %v449_v57, %v370_v56 }
 0x169   : > { %v421_v12 = vpop.xlane.xlu0 %420  ;;  %v500_v28 = vmul.f32 %v492_v33, %v1143_v4  ;;  %v462_v15 = vsub.f32 0.0, %v1168_v38  ;;  %v826_v16 = vpop.eup %825  ;;  %vm509_vm12 = vcmp.gt.f32.partialorder %v1155_v37, -0.001  ;;  %v523_v19 = vmul.f32 1.442695, %v1190_v52 }
 0x16a   : > { %831 = vpow2.f32 %v521_v2  ;;  %v479_v18 = vadd.f32 0.5, %v471_v7  ;;  %v472_v26 = vmul.f32 0.16666667, %v1198_v60  ;;  %v450_v21 = vsub.f32 %v404_v61, %v1039_v40 }
 0x16b   : > { %v499_v22 = vmul.f32 %v491_v63, %v1152_v17  ;;  %vm598_vm13 = vcmp.lt.s32.totalorder %v1177_v34, 200  ;;  %v737_v23 = vadd.f32 -1.0, %v826_v16  ;;  %v486_v24 = vmul.f32 %v478_v0, %v1168_v38 }
 0x16c   : > { %v424_v1 = vpop.xlane.xlu1 %423  ;;  %v828_v29 = vpop.eup %827  ;;  %v563_v25 = vmul.f32 %v459_v62, %v421_v12  ;;  %v493_v10 = vadd.f32 1.0, %v485_v5  ;;  %v487_v30 = vmul.f32 %v479_v18, %v1190_v52  ;;  %833 = vpow2.f32 %v523_v19 }
 0x16d   : > { %v736_v3 = vadd.f32 -1.0, %v828_v29  ;;  %v540_v31 = vsel %vm508_vm9, %v500_v28, %v737_v23  ;;  %v480_v40 = vadd.f32 0.5, %v472_v26  ;;  %v525_v32 = vmul.f32 1.442695, %v1198_v60  ;;  %v427_v4 = vpop.xlane.xlu0 %426 }
 0x16e   : > { %v548_v35 = vsub.f32 0.0, %v540_v31  ;;  %v564_v14 = vmul.f32 %v460_v44, %v424_v1  ;;  %vm510_vm15 = vcmp.gt.f32.partialorder %v1168_v38, -0.001  ;;  %v463_v9 = vsub.f32 0.0, %v1190_v52 }
 0x16f   : > { %v464_v36 = vsub.f32 0.0, %v1198_v60  ;;  %v1227_v42 = vsub.f32 %v450_v21, %v372_v8  ;;  %v539_v27 = vsel %vm507_vm10, %v499_v22, %v736_v3  ;;  %vm600_vm0 = vcmp.lt.s32.totalorder %v1180_v48, 200 }
 0x170   : > { %v494_v43 = vadd.f32 1.0, %v486_v24  ;;  %835 = vpow2.f32 %v525_v32  ;;  %v830_v13 = vpop.eup %829  ;;  %v547_v45 = vsub.f32 0.0, %v539_v27  ;;  %v556_v46 = vmul.f32 %v548_v35, %v548_v35  ;;  %v430_v2 = vpop.xlane.xlu1 %429 }
 0x171   : > { %v501_v47 = vmul.f32 %v493_v10, %v1155_v37  ;;  %vm511_vm1 = vcmp.gt.f32.partialorder %v1190_v52, -0.001  ;;  %v738_v49 = vadd.f32 -1.0, %v830_v13  ;;  %v495_v53 = vadd.f32 1.0, %v487_v30  ;;  %v433_v29 = vpop.xlane.xlu0 %432 }
 0x172   : > { %v488_v54 = vmul.f32 %v480_v40, %v1198_v60  ;;  %v473_v56 = vmul.f32 0.16666667, %v1208_v11  ;;  %v555_v17 = vmul.f32 %v547_v45, %v547_v45  ;;  %v572_v57 = vmul.f32 %v564_v14, %v556_v46 }
 0x173   : > { %v565_v33 = vmul.f32 %v461_v41, %v427_v4  ;;  %v527_v58 = vmul.f32 1.442695, %v1208_v11  ;;  %v541_v59 = vsel %vm509_vm12, %v501_v47, %v738_v49  ;;  %v502_v61 = vmul.f32 %v494_v43, %v1168_v38 }
 0x174   : > { %vm512_vm3 = vcmp.gt.f32.partialorder %v1198_v60, -0.001  ;;  %v481_v44 = vadd.f32 0.5, %v473_v56  ;;  %v832_v62 = vpop.eup %831  ;;  %v571_v63 = vmul.f32 %v563_v25, %v555_v17  ;;  %v607_v0 = vsel %vm599_vm11, %v572_v57, 0.0  ;;  %v436_v4 = vpop.xlane.xlu1 %435 }
 0x175   : > { %v549_v5 = vsub.f32 0.0, %v541_v59  ;;  %837 = vpow2.f32 %v527_v58  ;;  %v739_v41 = vadd.f32 -1.0, %v832_v62  ;;  %v503_v7 = vmul.f32 %v495_v53, %v1190_v52  ;;  %v439_v58 = vpop.xlane.xlu0 %438 }
 0x176   : > { %v496_v37 = vadd.f32 1.0, %v488_v54  ;;  %v474_v8 = vmul.f32 0.16666667, %v1227_v42  ;;  %v834_v12 = vpop.eup %833  ;;  %v606_v28 = vsel %vm598_vm13, %v571_v63, 0.0  ;;  %v616_v16 = vsel %vm614_vm14, %v607_v0, 0.0 }
 0x177   : > { %v557_v18 = vmul.f32 %v549_v5, %v549_v5  ;;  %v529_v19 = vmul.f32 1.442695, %v1227_v42  ;;  %v615_v39 = vsel %vm614_vm14, %v606_v28, 0.0  ;;  %v542_v26 = vsel %vm510_vm15, %v502_v61, %v739_v41 }
 0x178   : > { %v740_v21 = vadd.f32 -1.0, %v834_v12  ;;  %v489_v22 = vmul.f32 %v481_v44, %v1208_v11  ;;  %v617_v1 = vadd.f32 %v616_v16, %v615_v39  ;;  %v550_v24 = vsub.f32 0.0, %v542_v26  ;;  %v442_v16 = vpop.xlane.xlu1 %441 }
 0x179   : > { %v573_v23 = vmul.f32 %v565_v33, %v557_v18  ;;  %v482_v25 = vadd.f32 0.5, %v474_v8  ;;  %v566_v10 = vmul.f32 %v462_v15, %v430_v2  ;;  %v504_v3 = vmul.f32 %v496_v37, %v1198_v60 }
 0x17a   : > { %v836_v34 = vpop.eup %835  ;;  %v543_v30 = vsel %vm511_vm1, %v503_v7, %v740_v21  ;;  %839 = vpow2.f32 %v529_v19  ;;  %v558_v40 = vmul.f32 %v550_v24, %v550_v24  ;;  %v567_v27 = vmul.f32 %v463_v9, %v433_v29 }
 0x17b   : > { %v608_v31 = vsel %vm600_vm0, %v573_v23, 0.0  ;;  %v551_v32 = vsub.f32 0.0, %v543_v30  ;;  %v741_v35 = vadd.f32 -1.0, %v836_v34  ;;  %v497_v43 = vadd.f32 1.0, %v489_v22 }
 0x17c   : > { %v618_v14 = vsel %vm614_vm14, %v608_v31, 0.0  ;;  %v490_v38 = vmul.f32 %v482_v25, %v1227_v42  ;;  %v574_v13 = vmul.f32 %v566_v10, %v558_v40  ;;  %v586_v46 = vadd.s32 48, %v1146_v6 }
 0x17d   : > { %v619_v15 = vadd.f32 %v618_v14, %v617_v1  ;;  %v559_v52 = vmul.f32 %v551_v32, %v551_v32  ;;  %v544_v45 = vsel %vm512_vm3, %v504_v3, %v741_v35  ;;  %v568_v53 = vmul.f32 %v464_v36, %v436_v4 }
 0x17e   : > { %v552_v48 = vsub.f32 0.0, %v544_v45  ;;  %v609_v49 = vsel %vm601_vm2, %v574_v13, 0.0  ;;  %v505_v17 = vmul.f32 %v497_v43, %v1208_v11  ;;  %vm513_vm6 = vcmp.gt.f32.partialorder %v1208_v11, -0.001 }
 0x17f   : > { %v838_v47 = vpop.eup %837  ;;  %v575_v9 = vmul.f32 %v567_v27, %v559_v52  ;;  %v620_v54 = vsel %vm614_vm14, %v609_v49, 0.0  ;;  %v498_v59 = vadd.f32 1.0, %v490_v38  ;;  %v465_v61 = vsub.f32 0.0, %v1208_v11 }
 0x180   : > { %v560_v56 = vmul.f32 %v552_v48, %v552_v48  ;;  %v742_v57 = vadd.f32 -1.0, %v838_v47  ;;  %v621_v51 = vadd.f32 %v620_v54, %v619_v15  ;;  %v596_v62 = vadd.s32 %v1157_v20, %v586_v46 }
 0x181   : > { %v610_v33 = vsel %vm602_vm4, %v575_v9, 0.0  ;;  %v587_v63 = vadd.s32 56, %v1146_v6  ;;  %v569_v2 = vmul.f32 %v465_v61, %v439_v58  ;;  %v506_v8 = vmul.f32 %v498_v59, %v1227_v42 }
 0x182   : > { %v576_v50 = vmul.f32 %v568_v53, %v560_v56  ;;  %v545_v44 = vsel %vm513_vm6, %v505_v17, %v742_v57  ;;  %v622_v60 = vsel %vm614_vm14, %v610_v33, 0.0  ;;  %vm604_vm7 = vcmp.lt.s32.totalorder %v596_v62, 200 }
 0x183   : > { %v553_v36 = vsub.f32 0.0, %v545_v44  ;;  %v623_v5 = vadd.f32 %v622_v60, %v621_v51  ;;  %vm514_vm8 = vcmp.gt.f32.partialorder %v1227_v42, -0.001  ;;  %v597_v6 = vadd.s32 %v1157_v20, %v587_v63 }
 0x184   : > { %v840_v0 = vpop.eup %839  ;;  %v611_v41 = vsel %vm603_vm5, %v576_v50, 0.0  ;;  %v466_v18 = vsub.f32 0.0, %v1227_v42 }
 0x185   : > { %v624_v7 = vsel %vm614_vm14, %v611_v41, 0.0  ;;  %v561_v37 = vmul.f32 %v553_v36, %v553_v36  ;;  %v743_v11 = vadd.f32 -1.0, %v840_v0  ;;  %vm605_vm9 = vcmp.lt.s32.totalorder %v597_v6, 200 }
 0x186   : > { %v625_v55 = vadd.f32 %v624_v7, %v623_v5  ;;  %v570_v21 = vmul.f32 %v466_v18, %v442_v16 }
 0x187   : > { %v577_v12 = vmul.f32 %v569_v2, %v561_v37  ;;  %v546_v28 = vsel %vm514_vm8, %v506_v8, %v743_v11 }
 0x188   : > { %v554_v19 = vsub.f32 0.0, %v546_v28 }
 0x189   : > { %v612_v39 = vsel %vm604_vm7, %v577_v12, 0.0 }
 0x18a   : > { %v562_v26 = vmul.f32 %v554_v19, %v554_v19  ;;  %v626_v22 = vsel %vm614_vm14, %v612_v39, 0.0 }
 0x18b   : > { %v627_v23 = vadd.f32 %v626_v22, %v625_v55 }
 0x18c   : > { %v578_v1 = vmul.f32 %v570_v21, %v562_v26 }
 0x18e   : > { %v613_v24 = vsel %vm605_vm9, %v578_v1, 0.0 }
 0x18f   : > { %v628_v29 = vsel %vm614_vm14, %v613_v24, 0.0 }
 0x190   : > { %v629_v25 = vadd.f32 %v628_v29, %v627_v23 }
 0x192   : > { %630 = vadd.xlane.f32.xlu0 %v629_v25 }
 0x21f   : > { %v631_v20 = vpop.xlane.xlu0 %630 }
 0x220   : > { %v632_v34 = vrot.slane %v631_v20, 4 }
 0x222   : > { %v633_v42 = vadd.f32 %v632_v34, %v631_v20 }
 0x224   : > { %v634_v10 = vrot.slane %v633_v42, 2 }
 0x226   : > { %v635_v30 = vadd.f32 %v634_v10, %v633_v42 }
 0x228   : > { %v636_v3 = vrot.slane %v635_v30, 1 }
 0x22a   : > { %v637_v31 = vadd.f32 %v636_v3, %v635_v30 }
 0x22c   : > { %749 = vpush %v637_v31 }
 0x25d   : > { %s750_s19 = spop %749 }
 0x25e   : > { %v639_v40 = vstv %s750_s19 }
 0x25f   : > { %640 = vst [vmem:[%s204_s10] sm:$0xff] %v639_v40 }
 0x260   : > { %854 = shalt.err (!%p851_p3)
}
 0x261   : > { %s855_s30 = scalar_lea.hbm %s1295_s25, 128  ;;  %s859_s6 = scalar_lea.hbm %s1338_s3, 512 }
 0x262   : > { %p856_p4 = scmp.ne.s32.totalorder %s1295_s25, %s855_s30  ;;  %p860_p9 = scmp.lt.u32.totalorder %s1295_s25, %s1338_s3 }
 0x263   : > { %p861_p10 = scmp.lt.u32.totalorder %s859_s6, %s855_s30  ;;  %p863_p12 = scmp.lt.u32.totalorder %s855_s30, %s1295_s25 }
 0x264   : > { %p857_p7 = pnand %p856_p4, %p965_p5 }
 0x265   : > { %p862_p11 = por %p861_p10, %p860_p9 }
 0x266   : > { %p858_p8 = pneg %p857_p7 }
 0x267   : > { %p864_p13 = por %p863_p12, %p862_p11 }
 0x269   : > { %p865_p0 = pnand %p864_p13, %p858_p8 }
 0x26b   : > { %868 = shalt.err (!%p865_p0)
}
 0x26c   : > { %751 = dma.vmem_to_hbm [thread:$0]  (%p965_p5), %s1290_s11, 128, %s1295_s25, %s642_s26  }
 0x26d PF: > { %p757_p1 = scmp.ge.s32.totalorder %s903_s15, 2  ;;  %s667_s9 = sand.u32 1, %s891_s12  }
 0x26e   : > { %s668_s10 = scalar_lea.sflag [#allocation3], %s667_s9 }
 0x26f   : > { %p754_p2 = pnand %p757_p1, %p969_p6 }
 0x271   : > { %886 = dma.done.wait (!%p754_p2), %s668_s10, 128  }
 0x272   : > { %888 = vsyncadd (!%p754_p2), %s668_s10, 4294967168  ;;  %p13_p3 = scmp.ge.s32.totalorder %s952_s18, 6   ;;  %s1341_s12 = smov %s895_s13 }
 0x273   : > { %s1342_s13 = smov %s899_s14  ;;  %s1343_s14 = smov %s963_s21 }
 0x274   : > { %s1344_s15 = smov %s952_s18  ;;  %15 = sbr.rel (!%p13_p3) target bundleno = 3 (0x3), region = 70 }
 0x27b   :  { %673 = vsyncpa [#allocation3], 1 }
 0x27c   :  { %675 = vsyncpa [#allocation3 + $0x1], 1 }

</bundles_post_ra>
